<compile_context>
chip_gen: v5e
topology: v5e:2x2
jax: 0.10.0
libtpu: 0.0.40
codegen_flags: <defaults>
</compile_context>

<pallas_src>
import jax
import jax.numpy as jnp
from jax.experimental import pallas as pl
from jax.experimental.pallas import tpu as pltpu

_LANES = 128
_SUBLANES = 8


def _round_up(x, m):
    return (x + m - 1) // m * m


def _synthesis_loss_kernel(coarse_ref, dst_ref, views_ref, out_ref,
                           acc_valid, acc_tvh, acc_tvw):
    v = pl.program_id(1)
    dst = dst_ref[0].astype(jnp.float32)                 # (C, H, W)

    # --- once per batch element: coarse-vs-dst L1 (also inits acc) + TV ---
    @pl.when(v == 0)
    def _():
        x = coarse_ref[0].astype(jnp.float32)            # (C, H, W)
        acc_valid[...] = jnp.sum(jnp.abs(x - dst), axis=0)
        acc_tvh[...] = jnp.sum(jnp.abs(x[:, 1:, :] - x[:, :-1, :]), axis=0)
        acc_tvw[...] = jnp.sum(jnp.abs(x[:, :, 1:] - x[:, :, :-1]), axis=0)

    # --- every step: |views_chunk - dst| partial sums (VPU-only reduce) ---
    vs = views_ref[0].astype(jnp.float32)                # (Vc, C, H, W)
    acc_valid[...] += jnp.sum(jnp.abs(vs - dst[None]), axis=(0, 1))

    # --- per-b finalize: write raw partial sums into a lane-dense block ---
    @pl.when(v == pl.num_programs(1) - 1)
    def _():
        row = jax.lax.broadcasted_iota(jnp.int32, (_SUBLANES, _LANES), 0)
        col = jax.lax.broadcasted_iota(jnp.int32, (_SUBLANES, _LANES), 1)
        r0 = row == 0
        out = (jnp.where(r0 & (col == 0), jnp.sum(acc_valid[...]), 0.0)
               + jnp.where(r0 & (col == 1), jnp.sum(acc_tvh[...]), 0.0)
               + jnp.where(r0 & (col == 2), jnp.sum(acc_tvw[...]), 0.0))
        out_ref[0] = out.astype(out_ref.dtype)


def synthesis_loss(coarse, dst_color, coarse_views):
    """Pallas implementation of SynthesisLoss.forward (mode/eps are unused)."""
    B, C, H, W = coarse.shape
    V = coarse_views.shape[1]
    N = C * H * W
    itemsize = 4  # budget with the f32 worst case

    # Fetch several views per grid step so each DMA block is reasonably large.
    view_bytes = N * itemsize
    target = 1 << 20
    Vc = 1
    for d in range(1, V + 1):
        if V % d == 0 and d * view_bytes <= max(target, view_bytes):
            Vc = d
    grid = (B, V // Vc)

    # VMEM budget: 2x double-buffered blocks + accumulators + headroom,
    # capped below v7x's 64 MiB physical VMEM.
    block_total = (2 + Vc) * N * itemsize + _SUBLANES * _LANES * itemsize
    acc_bytes = 3 * _round_up(H, _SUBLANES) * _round_up(W, _LANES) * itemsize
    vmem_limit = int(min(2 * block_total + acc_bytes + (8 << 20), 48 << 20))

    cost = pl.CostEstimate(
        flops=3 * (1 + V) * B * N + 6 * B * N,
        transcendentals=0,
        bytes_accessed=itemsize * (B * N * (2 + V) + B * _SUBLANES * _LANES),
    )

    out = pl.pallas_call(
        _synthesis_loss_kernel,
        out_shape=jax.ShapeDtypeStruct((B, _SUBLANES, _LANES), jnp.float32),
        grid_spec=pltpu.PrefetchScalarGridSpec(
            num_scalar_prefetch=0,
            grid=grid,
            in_specs=[
                # structured coarse / dst: resident across the view axis.
                pl.BlockSpec((1, C, H, W), lambda b, v: (b, 0, 0, 0)),
                pl.BlockSpec((1, C, H, W), lambda b, v: (b, 0, 0, 0)),
                # Vc views per step, streamed and double-buffered.
                pl.BlockSpec((1, Vc, C, H, W), lambda b, v: (b, v, 0, 0, 0)),
            ],
            out_specs=pl.BlockSpec((1, _SUBLANES, _LANES),
                                   lambda b, v: (b, 0, 0)),
            scratch_shapes=[
                pltpu.VMEM((H, W), jnp.float32),        # L1 partial sums
                pltpu.VMEM((H - 1, W), jnp.float32),    # vertical TV
                pltpu.VMEM((H, W - 1), jnp.float32),    # horizontal TV
            ],
        ),
        compiler_params=pltpu.CompilerParams(
            dimension_semantics=("parallel", "arbitrary"),
            vmem_limit_bytes=vmem_limit,
        ),
        cost_estimate=cost,
    )(coarse, dst_color, coarse_views)

    # Weighted combine in plain JAX from the per-b raw sums.
    n_valid = float(B * N)
    n_tvh = float(B * C * (H - 1) * W)
    n_tvw = float(B * C * H * (W - 1))
    valid_loss = jnp.sum(out[:, 0, 0]) / n_valid
    tv_loss = jnp.sum(out[:, 0, 1]) / n_tvh + jnp.sum(out[:, 0, 2]) / n_tvw
    return valid_loss * 1.0 + tv_loss * 0.01


def synthesis_loss_ref(coarse, dst_color, coarse_views):
    """Pure-JAX reference matching the PyTorch module semantics."""
    valid_loss = jnp.mean(jnp.abs(coarse - dst_color))
    h_tv = jnp.mean(jnp.abs(coarse[:, :, 1:, :] - coarse[:, :, :-1, :]))
    w_tv = jnp.mean(jnp.abs(coarse[:, :, :, 1:] - coarse[:, :, :, :-1]))
    tv_loss = h_tv + w_tv
    for i in range(coarse_views.shape[1]):
        valid_loss += jnp.mean(jnp.abs(coarse_views[:, i] - dst_color))
    return valid_loss * 1.0 + tv_loss * 0.01


if __name__ == "__main__":
    B, C, H, W, V = 2, 4, 16, 16, 3

    key = jax.random.PRNGKey(0)
    k1, k2, k3 = jax.random.split(key, 3)
    coarse = jax.random.normal(k1, (B, C, H, W), dtype=jnp.float32)
    dst_color = jax.random.normal(k2, (B, C, H, W), dtype=jnp.float32)
    coarse_views = jax.random.normal(k3, (B, V, C, H, W), dtype=jnp.float32)

    loss = jax.block_until_ready(synthesis_loss(coarse, dst_color, coarse_views))
    ref = jax.block_until_ready(synthesis_loss_ref(coarse, dst_color, coarse_views))

    assert jnp.allclose(loss, ref, rtol=1e-5, atol=1e-6), (loss, ref)
    print("KERNEL_OK")
</pallas_src>

<mosaic_0001>
module attributes {stable_mosaic.version = 11 : i64} {
  func.func @_synthesis_loss_kernel(%arg0: i32, %arg1: i32, %arg2: memref<1x4x16x16xf32, #tpu.memory_space<vmem>>, %arg3: memref<1x4x16x16xf32, #tpu.memory_space<vmem>>, %arg4: memref<1x3x4x16x16xf32, #tpu.memory_space<vmem>>, %arg5: memref<1x8x128xf32, #tpu.memory_space<vmem>>, %arg6: memref<16x16xf32, #tpu.memory_space<vmem>>, %arg7: memref<15x16xf32, #tpu.memory_space<vmem>>, %arg8: memref<16x15xf32, #tpu.memory_space<vmem>>) attributes {dimension_semantics = [#tpu.dimension_semantics<parallel>, #tpu.dimension_semantics<arbitrary>], iteration_bounds = array<i64: 2, 1>, scalar_prefetch = 0 : i64, scratch_operands = 3 : i64, tpu.core_type = #tpu.core_type<tc>, window_params = [{transform_indices = @transform_0, window_bounds = array<i64: 1, 4, 16, 16>}, {transform_indices = @transform_1, window_bounds = array<i64: 1, 4, 16, 16>}, {transform_indices = @transform_2, window_bounds = array<i64: 1, 3, 4, 16, 16>}, {transform_indices = @transform_3, window_bounds = array<i64: 1, 8, 128>}]} {
    %c0 = arith.constant 0 : index
    %c0_0 = arith.constant 0 : index
    %c0_1 = arith.constant 0 : index
    %c0_2 = arith.constant 0 : index
    %0 = vector.load %arg3[%c0, %c0_0, %c0_1, %c0_2] : memref<1x4x16x16xf32, #tpu.memory_space<vmem>>, vector<1x4x16x16xf32>
    %1 = vector.shape_cast %0 : vector<1x4x16x16xf32> to vector<4x16x16xf32>
    %c0_i32 = arith.constant 0 : i32
    %2 = arith.cmpi eq, %arg1, %c0_i32 : i32
    %3 = arith.extui %2 : i1 to i32
    %c0_i32_3 = arith.constant 0 : i32
    %4 = arith.cmpi ne, %3, %c0_i32_3 : i32
    scf.if %4 {
      %c0_15 = arith.constant 0 : index
      %c0_16 = arith.constant 0 : index
      %c0_17 = arith.constant 0 : index
      %c0_18 = arith.constant 0 : index
      %18 = vector.load %arg2[%c0_15, %c0_16, %c0_17, %c0_18] : memref<1x4x16x16xf32, #tpu.memory_space<vmem>>, vector<1x4x16x16xf32>
      %19 = vector.shape_cast %18 : vector<1x4x16x16xf32> to vector<4x16x16xf32>
      %20 = arith.subf %19, %1 : vector<4x16x16xf32>
      %21 = math.absf %20 : vector<4x16x16xf32>
      %cst_19 = arith.constant dense<0.000000e+00> : vector<16x16xf32>
      %22 = vector.multi_reduction <add>, %21, %cst_19 [0] : vector<4x16x16xf32> to vector<16x16xf32>
      %c0_20 = arith.constant 0 : index
      %c0_21 = arith.constant 0 : index
      %23 = vector.load %arg6[%c0_20, %c0_21] : memref<16x16xf32, #tpu.memory_space<vmem>>, vector<16x16xf32>
      tpu.vector_store %arg6[%c0_20, %c0_21], %22 {strides = array<i32>} : memref<16x16xf32, #tpu.memory_space<vmem>>, vector<16x16xf32>,
      %24 = vector.extract_strided_slice %19 {offsets = [0, 1, 0], sizes = [4, 15, 16], strides = [1, 1, 1]} : vector<4x16x16xf32> to vector<4x15x16xf32>
      %25 = vector.extract_strided_slice %19 {offsets = [0, 0, 0], sizes = [4, 15, 16], strides = [1, 1, 1]} : vector<4x16x16xf32> to vector<4x15x16xf32>
      %26 = arith.subf %24, %25 : vector<4x15x16xf32>
      %27 = math.absf %26 : vector<4x15x16xf32>
      %cst_22 = arith.constant dense<0.000000e+00> : vector<15x16xf32>
      %28 = vector.multi_reduction <add>, %27, %cst_22 [0] : vector<4x15x16xf32> to vector<15x16xf32>
      %c0_23 = arith.constant 0 : index
      %c0_24 = arith.constant 0 : index
      %29 = vector.load %arg7[%c0_23, %c0_24] : memref<15x16xf32, #tpu.memory_space<vmem>>, vector<15x16xf32>
      tpu.vector_store %arg7[%c0_23, %c0_24], %28 {strides = array<i32>} : memref<15x16xf32, #tpu.memory_space<vmem>>, vector<15x16xf32>,
      %30 = vector.extract_strided_slice %19 {offsets = [0, 0, 1], sizes = [4, 16, 15], strides = [1, 1, 1]} : vector<4x16x16xf32> to vector<4x16x15xf32>
      %31 = vector.extract_strided_slice %19 {offsets = [0, 0, 0], sizes = [4, 16, 15], strides = [1, 1, 1]} : vector<4x16x16xf32> to vector<4x16x15xf32>
      %32 = arith.subf %30, %31 : vector<4x16x15xf32>
      %33 = math.absf %32 : vector<4x16x15xf32>
      %cst_25 = arith.constant dense<0.000000e+00> : vector<16x15xf32>
      %34 = vector.multi_reduction <add>, %33, %cst_25 [0] : vector<4x16x15xf32> to vector<16x15xf32>
      %c0_26 = arith.constant 0 : index
      %c0_27 = arith.constant 0 : index
      %35 = vector.load %arg8[%c0_26, %c0_27] : memref<16x15xf32, #tpu.memory_space<vmem>>, vector<16x15xf32>
      tpu.vector_store %arg8[%c0_26, %c0_27], %34 {strides = array<i32>} : memref<16x15xf32, #tpu.memory_space<vmem>>, vector<16x15xf32>,
    } else {
    }
    %c0_4 = arith.constant 0 : index
    %c0_5 = arith.constant 0 : index
    %c0_6 = arith.constant 0 : index
    %c0_7 = arith.constant 0 : index
    %c0_8 = arith.constant 0 : index
    %5 = vector.load %arg4[%c0_4, %c0_5, %c0_6, %c0_7, %c0_8] : memref<1x3x4x16x16xf32, #tpu.memory_space<vmem>>, vector<1x3x4x16x16xf32>
    %6 = vector.shape_cast %5 : vector<1x3x4x16x16xf32> to vector<3x4x16x16xf32>
    %c0_9 = arith.constant 0 : index
    %c0_10 = arith.constant 0 : index
    %7 = vector.load %arg6[%c0_9, %c0_10] : memref<16x16xf32, #tpu.memory_space<vmem>>, vector<16x16xf32>
    %8 = vector.shape_cast %1 : vector<4x16x16xf32> to vector<1x4x16x16xf32>
    %9 = vector.broadcast %8 : vector<1x4x16x16xf32> to vector<3x4x16x16xf32>
    %10 = arith.subf %6, %9 : vector<3x4x16x16xf32>
    %11 = math.absf %10 : vector<3x4x16x16xf32>
    %cst = arith.constant dense<0.000000e+00> : vector<16x16xf32>
    %12 = vector.multi_reduction <add>, %11, %cst [0, 1] : vector<3x4x16x16xf32> to vector<16x16xf32>
    %13 = arith.addf %7, %12 : vector<16x16xf32>
    %c0_11 = arith.constant 0 : index
    %c0_12 = arith.constant 0 : index
    %14 = vector.load %arg6[%c0_11, %c0_12] : memref<16x16xf32, #tpu.memory_space<vmem>>, vector<16x16xf32>
    tpu.vector_store %arg6[%c0_11, %c0_12], %13 {strides = array<i32>} : memref<16x16xf32, #tpu.memory_space<vmem>>, vector<16x16xf32>,
    %c0_i32_13 = arith.constant 0 : i32
    %15 = arith.cmpi eq, %arg1, %c0_i32_13 : i32
    %16 = arith.extui %15 : i1 to i32
    %c0_i32_14 = arith.constant 0 : i32
    %17 = arith.cmpi ne, %16, %c0_i32_14 : i32
    scf.if %17 {
      %18 = tpu.iota {dimensions = array<i32: 0>} : vector<8x128xi32>
      %19 = tpu.iota {dimensions = array<i32: 1>} : vector<8x128xi32>
      %c0_i32_15 = arith.constant 0 : i32
      %20 = vector.broadcast %c0_i32_15 : i32 to vector<8x128xi32>
      %21 = arith.cmpi eq, %18, %20 : vector<8x128xi32>
      %c0_i32_16 = arith.constant 0 : i32
      %22 = vector.broadcast %c0_i32_16 : i32 to vector<8x128xi32>
      %23 = arith.cmpi eq, %19, %22 : vector<8x128xi32>
      %24 = arith.andi %21, %23 : vector<8x128xi1>
      %c0_17 = arith.constant 0 : index
      %c0_18 = arith.constant 0 : index
      %25 = vector.load %arg6[%c0_17, %c0_18] : memref<16x16xf32, #tpu.memory_space<vmem>>, vector<16x16xf32>
      %26 = vector.shape_cast %25 : vector<16x16xf32> to vector<1x16x16xf32>
      %cst_19 = arith.constant dense<0.000000e+00> : vector<1xf32>
      %27 = vector.multi_reduction <add>, %26, %cst_19 [1, 2] : vector<1x16x16xf32> to vector<1xf32>
      %28 = vector.shape_cast %27 : vector<1xf32> to vector<1x1x1xf32>
      %29 = vector.extract %28[0, 0, 0] : f32 from vector<1x1x1xf32>
      %cst_20 = arith.constant 0.000000e+00 : f32
      %30 = vector.broadcast %29 : f32 to vector<8x128xf32>
      %31 = vector.broadcast %cst_20 : f32 to vector<8x128xf32>
      %32 = arith.select %24, %30, %31 : vector<8x128xi1>, vector<8x128xf32>
      %c1_i32 = arith.constant 1 : i32
      %33 = vector.broadcast %c1_i32 : i32 to vector<8x128xi32>
      %34 = arith.cmpi eq, %19, %33 : vector<8x128xi32>
      %35 = arith.andi %21, %34 : vector<8x128xi1>
      %c0_21 = arith.constant 0 : index
      %c0_22 = arith.constant 0 : index
      %36 = vector.load %arg7[%c0_21, %c0_22] : memref<15x16xf32, #tpu.memory_space<vmem>>, vector<15x16xf32>
      %37 = vector.shape_cast %36 : vector<15x16xf32> to vector<1x15x16xf32>
      %cst_23 = arith.constant dense<0.000000e+00> : vector<1xf32>
      %38 = vector.multi_reduction <add>, %37, %cst_23 [1, 2] : vector<1x15x16xf32> to vector<1xf32>
      %39 = vector.shape_cast %38 : vector<1xf32> to vector<1x1x1xf32>
      %40 = vector.extract %39[0, 0, 0] : f32 from vector<1x1x1xf32>
      %cst_24 = arith.constant 0.000000e+00 : f32
      %41 = vector.broadcast %40 : f32 to vector<8x128xf32>
      %42 = vector.broadcast %cst_24 : f32 to vector<8x128xf32>
      %43 = arith.select %35, %41, %42 : vector<8x128xi1>, vector<8x128xf32>
      %44 = arith.addf %32, %43 : vector<8x128xf32>
      %c2_i32 = arith.constant 2 : i32
      %45 = vector.broadcast %c2_i32 : i32 to vector<8x128xi32>
      %46 = arith.cmpi eq, %19, %45 : vector<8x128xi32>
      %47 = arith.andi %21, %46 : vector<8x128xi1>
      %c0_25 = arith.constant 0 : index
      %c0_26 = arith.constant 0 : index
      %48 = vector.load %arg8[%c0_25, %c0_26] : memref<16x15xf32, #tpu.memory_space<vmem>>, vector<16x15xf32>
      %49 = vector.shape_cast %48 : vector<16x15xf32> to vector<1x16x15xf32>
      %cst_27 = arith.constant dense<0.000000e+00> : vector<1xf32>
      %50 = vector.multi_reduction <add>, %49, %cst_27 [1, 2] : vector<1x16x15xf32> to vector<1xf32>
      %51 = vector.shape_cast %50 : vector<1xf32> to vector<1x1x1xf32>
      %52 = vector.extract %51[0, 0, 0] : f32 from vector<1x1x1xf32>
      %cst_28 = arith.constant 0.000000e+00 : f32
      %53 = vector.broadcast %52 : f32 to vector<8x128xf32>
      %54 = vector.broadcast %cst_28 : f32 to vector<8x128xf32>
      %55 = arith.select %47, %53, %54 : vector<8x128xi1>, vector<8x128xf32>
      %56 = arith.addf %44, %55 : vector<8x128xf32>
      %c0_29 = arith.constant 0 : index
      %c0_30 = arith.constant 0 : index
      %c0_31 = arith.constant 0 : index
      %57 = vector.load %arg5[%c0_29, %c0_30, %c0_31] : memref<1x8x128xf32, #tpu.memory_space<vmem>>, vector<1x8x128xf32>
      %58 = vector.shape_cast %57 : vector<1x8x128xf32> to vector<8x128xf32>
      %59 = vector.shape_cast %56 : vector<8x128xf32> to vector<1x8x128xf32>
      tpu.vector_store %arg5[%c0_29, %c0_30, %c0_31], %59 {strides = array<i32>} : memref<1x8x128xf32, #tpu.memory_space<vmem>>, vector<1x8x128xf32>,
    } else {
    }
    return
  }
  func.func @transform_0(%arg0: i32, %arg1: i32) -> (i32, i32, i32, i32) {
    %c0_i32 = arith.constant 0 : i32
    %c0_i32_0 = arith.constant 0 : i32
    %c0_i32_1 = arith.constant 0 : i32
    %c0_i32_2 = arith.constant 0 : i32
    return %arg0, %c0_i32, %c0_i32_0, %c0_i32_1 : i32, i32, i32, i32
  }
  func.func @transform_1(%arg0: i32, %arg1: i32) -> (i32, i32, i32, i32) {
    %c0_i32 = arith.constant 0 : i32
    %c0_i32_0 = arith.constant 0 : i32
    %c0_i32_1 = arith.constant 0 : i32
    %c0_i32_2 = arith.constant 0 : i32
    return %arg0, %c0_i32, %c0_i32_0, %c0_i32_1 : i32, i32, i32, i32
  }
  func.func @transform_2(%arg0: i32, %arg1: i32) -> (i32, i32, i32, i32, i32) {
    %c0_i32 = arith.constant 0 : i32
    %c0_i32_0 = arith.constant 0 : i32
    %c0_i32_1 = arith.constant 0 : i32
    %c0_i32_2 = arith.constant 0 : i32
    return %arg0, %arg1, %c0_i32, %c0_i32_0, %c0_i32_1 : i32, i32, i32, i32, i32
  }
  func.func @transform_3(%arg0: i32, %arg1: i32) -> (i32, i32, i32) {
    %c0_i32 = arith.constant 0 : i32
    %c0_i32_0 = arith.constant 0 : i32
    %c0_i32_1 = arith.constant 0 : i32
    return %arg0, %c0_i32, %c0_i32_0 : i32, i32, i32
  }
}

</mosaic_0001>

<bundles_post_ra>
// kernel: tpu_custom_call.1
= control target key start
LH: loop header
LB: loop body
LE: loop exit
PB: predicated region body
PF: predicated region fallthrough
CT: control target
= control target key end

     0   :  { %s1517_s0 = inlined_call_operand.hbm [shape: f32[2,4,16,16], index: 0, kind: input, shape index: {}]   ;;  %s1518_s1 = inlined_call_operand.hbm [shape: f32[2,4,16,16], index: 1, kind: input, shape index: {}]   ;;  %s1519_s2 = inlined_call_operand.hbm [shape: f32[2,3,4,16,16], index: 2, kind: input, shape index: {}]   ;;  %s1520_s3 = inlined_call_operand.hbm [shape: f32[2,8,128], index: 3, kind: output, shape index: {}]  }
   0x1   :  { %1529 = sst [smem:[#allocation22_spill]] %s1518_s1 }
   0x2   :  { %8 = vsyncpa [#allocation6], 0 }
   0x3   :  { %10 = vsyncpa [#allocation6 + $0x1], 0 }
   0x4   :  { %11 = vsyncpa [#allocation9], 0 }
   0x5   :  { %13 = vsyncpa [#allocation9 + $0x1], 0 }
   0x6   :  { %14 = vsyncpa [#allocation7], 0 }
   0x7   :  { %16 = vsyncpa [#allocation7 + $0x1], 0  ;;  %s1111_s12 = smov 0   ;;  %s1113_s13 = smov 0  }
   0x8   :  { %s1115_s14 = smov 0   ;;  %s1117_s15 = smov 0  }
   0x9   :  { %s1119_s16 = smov 0   ;;  %s1121_s17 = smov 0  }
   0xa LB: > { %1530 = sst [smem:[#allocation15_spill]] %s1065_s12  ;;  %s1142_s18 = sadd.s32 4294967295, %s1085_s17   ;;  %s1085_s17 = sphi %s1121_s17, %s22_s17   ;;  %s1081_s16 = sphi %s1119_s16, %s1554_s16   ;;  %s1077_s15 = sphi %s1117_s15, %s1553_s15   ;;  %s1073_s14 = sphi %s1115_s14, %s1549_s14   ;;  %s1069_s13 = sphi %s1113_s13, %s1552_s13   ;;  %s1065_s12 = sphi %s1111_s12, %s1551_s12  }
   0xb   : > { %1531 = sst [smem:[#allocation16_spill]] %s1073_s14  ;;  %s804_s19 = sadd.s32 4294967294, %s1085_s17  }
   0xc   : > { %1532 = sst [smem:[#allocation17_spill]] %s1085_s17  ;;  %s34_s20 = sadd.s32 1, %s1081_s16 }
   0xd   : > { %s41_s21 = sadd.s32 1, %s1073_s14  ;;  %p36_p0 = scmp.ge.s32.totalorder %s34_s20, 2 }
   0xe   : > { %p48_p1 = scmp.ne.s32.totalorder %s1073_s14, %s1069_s13  ;;  %p49_p2 = scmp.eq.s32.totalorder %s1085_s17, 0 }
   0xf   : > { %p54_p3 = scmp.ne.s32.totalorder %s1069_s13, %s1065_s12  ;;  %s1556_s20 = smov (%p36_p0, %s34_s20), 0 }
  0x10   : > { %1533 = sst [smem:[#allocation18_spill]] %s1556_s20  ;;  %p1154_p4 = por %p49_p2, %p48_p1 }
  0x11   : > { %p55_p5 = scmp.eq.s32.totalorder %s1142_s18, 0  ;;  %s38_s23 = ssub.s32 %s1081_s16, %s1556_s20 }
  0x12   : > { %p132_p6 = scmp.eq.s32.totalorder %s1142_s18, 1  ;;  %p39_p7 = scmp.eq.s32.totalorder %s38_s23, 0 }
  0x13   : > { %p1162_p8 = por %p55_p5, %p54_p3  ;;  %p138_p10 = scmp.eq.s32.totalorder %s804_s19, 1 }
  0x14   : > { %p1166_p9 = por %p132_p6, %p48_p1  ;;  %p806_p12 = scmp.ge.s32.totalorder %s1085_s17, 2 }
  0x15   : > { %s1171_s26 = scalar_select %p39_p7, %s1073_s14, %s41_s21  }
  0x16   : > { %s1536_s25 = scalar_select %p1166_p9, 1, 0 }
  0x17   : > { %1538 = sst [smem:[#allocation20_spill]] %s1171_s26  ;;  %p1173_p11 = por %p138_p10, %p54_p3 }
  0x18   : > { %1537 = sst [smem:[#allocation19_spill]] %s1536_s25  ;;  %p855_p13 = scmp.lt.s32.totalorder %s1085_s17, 2 }
  0x19   : > { %s1539_s27 = scalar_select %p1173_p11, 1, 0 }
  0x1a   : > { %s1180_s28 = sand.u32 1, %s1073_s14   ;;  %s822_s30 = sshll.u32 %s1081_s16, 6 }
  0x1b   : > { %1540 = sst [smem:[#allocation21_spill]] %s1539_s27  ;;  %s807_s29 = sshll.u32 %s1180_s28, 6 }
  0x1c   : > { %p1186_p0 = pnand %p855_p13, %p1154_p4  ;;  %s180_s5 = sand.u32 1, %s1085_s17  }
  0x1d   : > { %s1542_s1 = sld [smem:[#allocation22_spill]]  ;;  %s184_s10 = scalar_lea.vmem [#allocation8], %s807_s29 }
  0x1e   : > { %s192_s11 = sshll.u32 %s184_s10, 4  ;;  %s181_s19 = scalar_lea.sflag [#allocation9], %s180_s5  ;;  %s193_s11 = int_to_ptr.vmem [resolvable:$true] %s192_s11 }
  0x1f   : > { %s1087_s21 = smov 128   ;;  %s1088_s22 = smov 8  }
  0x20   : > { %p814_p1 = scmp.ge.s32.totalorder %s1085_s17, 1  ;;  %p225_p2 = scmp.lt.s32.totalorder %s1085_s17, 3 }
  0x21   : > { %s159_s5 = scalar_lea.sflag [#allocation6], %s1180_s28 }
  0x22   : > { %p1198_p3 = pnand %p814_p1, %p225_p2 }
  0x23   : > { %s189_s8 = scalar_lea.hbm %s1542_s1, %s822_s30  ;;  %s162_s1 = scalar_lea.vmem [#allocation5], %s807_s29 }
  0x24   : > { %s190_s9 = sshll.u32 %s189_s8, 4  ;;  %s167_s8 = scalar_lea.hbm %s1517_s0, %s822_s30  ;;  %s191_s9 = int_to_ptr.hbm [resolvable:$true] %s190_s9 }
  0x25   : > { %847 = dma.hbm_to_vmem [thread:$0]  (!%p1186_p0), %s191_s9, 1024, %s193_s11, %s181_s19, %s1087_s21, %s1087_s21, %s1088_s22  }
  0x26   : > { %s168_s10 = sshll.u32 %s167_s8, 4  ;;  %s170_s20 = sshll.u32 %s162_s1, 4  ;;  %s169_s10 = int_to_ptr.hbm [resolvable:$true] %s168_s10  ;;  %s171_s20 = int_to_ptr.vmem [resolvable:$true] %s170_s20 }
  0x27   : > { %844 = dma.hbm_to_vmem [thread:$0]  (!%p1186_p0), %s169_s10, 1024, %s171_s20, %s159_s5, %s1087_s21, %s1087_s21, %s1088_s22  }
  0x28   : > { %s824_s9 = smul.u32 192, %s1180_s28  ;;  %s1218_s1 = sand.u32 (!%p1198_p3), 1, %s1069_s13  }
  0x29   : > { %s825_s11 = smul.u32 192, %s1081_s16  ;;  %s815_s20 = sshll.u32 (!%p1198_p3), %s1218_s1, 6 }
  0x2a   : > { %s206_s27 = scalar_lea.vmem [#allocation10], %s824_s9  ;;  %229 = sbr.rel (%p1198_p3) target bundleno = 501 (0x1f5), region = 32 }
  0x2b   : > { %s214_s17 = scalar_lea.hbm %s1519_s2, %s825_s11  ;;  %s217_s12 = sshll.u32 %s206_s27, 4  ;;  %s218_s12 = int_to_ptr.vmem [resolvable:$true] %s217_s12 }
  0x2c   : > { %s215_s25 = sshll.u32 %s214_s17, 4  ;;  %s232_s28 = scalar_lea.sflag (!%p1198_p3), [#allocation6], %s1218_s1  ;;  %s216_s25 = int_to_ptr.hbm [resolvable:$true] %s215_s25 }
  0x2d   : > { %850 = dma.hbm_to_vmem [thread:$0]  (!%p1186_p0), %s216_s25, 3072, %s218_s12, %s181_s19, %s1087_s21, %s1087_s21, %s1088_s22  }
  0x2e   : > { %s1222_s14 = scalar_lea.vmem (!%p1198_p3), [#allocation5], %s815_s20 }
  0x2f   : > { %1052 = dma.done.wait (%p1162_p8), %s232_s28, 1024  }
  0x30   : > { %1054 = vsyncadd (%p1162_p8), %s232_s28, 4294966272  ;;  %s241_s12 = sand.u32 1, %s1142_s18   ;;  %s1229_s25 = scalar_lea.vmem [#allocation8], %s815_s20 }
  0x31   : > { %s242_s17 = scalar_lea.sflag [#allocation9], %s241_s12 }
  0x32   : > { %1056 = dma.done.wait (%p1162_p8), %s242_s17, 4096  }
  0x33   : > { %1058 = vsyncadd (%p1162_p8), %s242_s17, 4294963200  ;;  %s826_s26 = smul.u32 192, %s1218_s1  ;;  %v1237_v0 = vld [vmem:[%s1222_s14 + $0x10] sm:$0xff]  ;;  %s1089_s27 = smov 1   ;;  %v1242_v1 = vld [vmem:[%s1222_s14] sm:$0xff]  ;;  %vm351_vm0 = vcmask 1040384  }
  0x34   : > { %409 = vrot.lane.b32.xlu1 %v1237_v0, %s1089_s27  ;;  %405 = vrot.lane.b32.xlu0 %v1242_v1, %s1089_s27  ;;  %v292_v3 = vld [vmem:[%s1229_s25 + $0x10] sm:$0xff]  ;;  %v355_v4 = vrot.slane %v1237_v0, 7  ;;  %v352_v6 = vrot.slane %v1242_v1, 7  ;;  %v1256_v10 = vld [vmem:[%s1222_s14 + $0x18] sm:$0xff]  ;;  %vm326_vm1 = vcmask 130048   ;;  %vm388_vm2 = vcmask 130049  }
  0x35   : > { %s1246_s18 = scalar_lea.vmem [#allocation10], %s826_s26  ;;  %v312_v8 = vsub.f32 %v1237_v0, %v292_v3  ;;  %v290_v14 = vld [vmem:[%s1229_s25] sm:$0xff]  ;;  %v1262_v15 = vld [vmem:[%s1222_s14 + $0x8] sm:$0xff]  ;;  %v356_v17 = vrot.slane %v1256_v10, 7  ;;  %v1274_v27 = vld [vmem:[%s1229_s25 + $0x18] sm:$0xff]  ;;  %vm445_vm3 = vcmask 130056  }
  0x36   : > { %v473_v2 = vld [vmem:[%s1246_s18 + $0x10] sm:$0xff]  ;;  %v374_v11 = vsub.f32 %v1237_v0, %v355_v4  ;;  %v471_v13 = vld [vmem:[%s1246_s18] sm:$0xff]  ;;  %v310_v16 = vsub.f32 %v1242_v1, %v290_v14  ;;  %v372_v18 = vsub.f32 %v1242_v1, %v352_v6  ;;  %v474_v26 = vld [vmem:[%s1246_s18 + $0x18] sm:$0xff]  ;;  %v313_v36 = vsub.f32 %v1256_v10, %v1274_v27  ;;  %s1090_s24 = smov 127   ;;  %s817_s4 = sshll.u32 %s1218_s1, 3 }
  0x37   : > { %v481_v5 = vld [vmem:[%s1246_s18 + $0x50] sm:$0xff]  ;;  %v499_v9 = vsub.f32 %v473_v2, %v292_v3  ;;  %v320_v19 = vand.u32 2147483647, %v312_v8  ;;  %v479_v22 = vld [vmem:[%s1246_s18 + $0x40] sm:$0xff]  ;;  %v497_v23 = vsub.f32 %v471_v13, %v290_v14  ;;  %v357_v28 = vsel %vm351_vm0, %v355_v4, %v356_v17  ;;  %v472_v30 = vld [vmem:[%s1246_s18 + $0x8] sm:$0xff]  ;;  %s819_s19 = sshll.u32 %s1077_s15, 3 }
  0x38   : > { %v489_v7 = vld [vmem:[%s1246_s18 + $0x90] sm:$0xff]  ;;  %v507_v12 = vsub.f32 %v481_v5, %v292_v3  ;;  %v382_v24 = vand.u32 2147483647, %v374_v11  ;;  %v318_v29 = vand.u32 2147483647, %v310_v16  ;;  %v1279_v31 = vld [vmem:[%s1229_s25 + $0x8] sm:$0xff]  ;;  %v505_v35 = vsub.f32 %v479_v22, %v290_v14  ;;  %s674_s23 = scalar_lea.hbm %s1520_s3, %s819_s19 }
  0x39   : > { %v515_v20 = vsub.f32 %v489_v7, %v292_v3  ;;  %v523_v21 = vand.u32 2147483647, %v499_v9  ;;  %v1282_v32 = vld [vmem:[%s1222_s14 + $0x20] sm:$0xff]  ;;  %v380_v34 = vand.u32 2147483647, %v372_v18  ;;  %v353_v37 = vrot.slane %v1262_v15, 7 }
  0x3a   : > { %v531_v25 = vand.u32 2147483647, %v507_v12  ;;  %v487_v33 = vld [vmem:[%s1246_s18 + $0x80] sm:$0xff]  ;;  %413 = vrot.lane.b32.xlu2 %v1282_v32, %s1089_s27  ;;  %v328_v38 = vsel %vm326_vm1, %v320_v19, 0.0  ;;  %v521_v40 = vand.u32 2147483647, %v497_v23  ;;  %v375_v41 = vsub.f32 %v1256_v10, %v357_v28 }
  0x3b   : > { %v1291_v39 = vand.u32 2147483647, %v515_v20  ;;  %v1295_v42 = vld [vmem:[%s1222_s14 + $0x38] sm:$0xff]  ;;  %v500_v44 = vsub.f32 %v474_v26, %v1274_v27  ;;  %v311_v45 = vsub.f32 %v1262_v15, %v1279_v31  ;;  %v354_v46 = vsel %vm351_vm0, %v352_v6, %v353_v37  ;;  %v1304_v48 = vld [vmem:[%s1222_s14 + $0x30] sm:$0xff]  ;;  %v480_v61 = vld [vmem:[%s1246_s18 + $0x48] sm:$0xff]  ;;  %s288_s6 = scalar_lea.vmem [#allocation11], %s817_s4 }
  0x3c   : > { %411 = vrot.lane.b32.xlu1 %v1256_v10, %s1089_s27  ;;  %407 = vrot.lane.b32.xlu0 %v1262_v15, %s1089_s27  ;;  %v482_v43 = vld [vmem:[%s1246_s18 + $0x58] sm:$0xff]  ;;  %v498_v47 = vsub.f32 %v472_v30, %v1279_v31  ;;  %v547_v49 = vsel %vm326_vm1, %v523_v21, 0.0  ;;  %v327_v50 = vsel %vm326_vm1, %v318_v29, 0.0  ;;  %v513_v51 = vsub.f32 %v487_v33, %v290_v14  ;;  %v1322_v62 = vld [vmem:[%s1222_s14 + $0x28] sm:$0xff]  ;;  %s676_s8 = sshll.u32 %s288_s6, 4  ;;  %s678_s5 = sshll.u32 %s674_s23, 4  ;;  %s677_s8 = int_to_ptr.vmem [resolvable:$true] %s676_s8  ;;  %s679_s5 = int_to_ptr.hbm [resolvable:$true] %s678_s5 }
  0x3d   : > { %v373_v52 = vsub.f32 %v1262_v15, %v354_v46  ;;  %v390_v53 = vsel %vm388_vm2, %v382_v24, 0.0  ;;  %v389_v54 = vsel %vm388_vm2, %v380_v34, 0.0  ;;  %v529_v55 = vand.u32 2147483647, %v505_v35  ;;  %v478_v9 = vld [vmem:[%s1246_s18 + $0x38] sm:$0xff]  ;;  %v477_v17 = vld [vmem:[%s1246_s18 + $0x30] sm:$0xff] }
  0x3e   : > { %v321_v56 = vand.u32 2147483647, %v313_v36  ;;  %v1314_v57 = vsel %vm326_vm1, %v531_v25, 0.0  ;;  %v546_v58 = vsel %vm326_vm1, %v521_v40, 0.0  ;;  %v383_v59 = vand.u32 2147483647, %v375_v41 }
  0x3f   : > { %v508_v60 = vsub.f32 %v482_v43, %v1274_v27  ;;  %v329_v63 = vadd.f32 %v328_v38, %v327_v50  ;;  %v524_v2 = vand.u32 2147483647, %v500_v44  ;;  %v319_v3 = vand.u32 2147483647, %v311_v45  ;;  %v1338_v16 = vld [vmem:[%s1229_s25 + $0x38] sm:$0xff]  ;;  %v1342_v18 = vld [vmem:[%s1229_s25 + $0x30] sm:$0xff] }
  0x40   : > { %v522_v4 = vand.u32 2147483647, %v498_v47  ;;  %v1324_v5 = vadd.f32 %v390_v53, %v389_v54  ;;  %v1326_v6 = vand.u32 2147483647, %v513_v51  ;;  %v381_v7 = vand.u32 2147483647, %v373_v52 }
  0x41   : > { %v362_v8 = vrot.slane %v1295_v42, 7  ;;  %v1330_v11 = vadd.f32 %v547_v49, %v546_v58  ;;  %v1333_v12 = vsel %vm326_vm1, %v529_v55, 0.0  ;;  %v335_v13 = vsel %vm326_vm1, %v321_v56, 0.0  ;;  %v1349_v20 = vld [vmem:[%s1246_s18 + $0x88] sm:$0xff]  ;;  %v1362_v30 = vld [vmem:[%s1246_s18 + $0x78] sm:$0xff]  ;;  %v475_v41 = vld [vmem:[%s1246_s18 + $0x20] sm:$0xff] }
  0x42   : > { %v506_v14 = vsub.f32 %v480_v61, %v1279_v31  ;;  %415 = vrot.lane.b32.xlu2 %v1322_v62, %s1089_s27  ;;  %v1346_v19 = vand.u32 2147483647, %v508_v60  ;;  %v317_v21 = vsub.f32 %v1295_v42, %v1338_v16  ;;  %v361_v22 = vrot.slane %v1304_v48, 7  ;;  %v1374_v43 = vld [vmem:[%s1229_s25 + $0x20] sm:$0xff]  ;;  %v485_v47 = vld [vmem:[%s1246_s18 + $0x70] sm:$0xff]  ;;  %s664_s15 = scalar_lea.sflag [#allocation7], %s1218_s1 }
  0x43   : > { %v316_v23 = vsub.f32 %v1304_v48, %v1342_v18  ;;  %v397_v24 = vsel %vm326_vm1, %v383_v59, 0.0  ;;  %v570_v25 = vsel %vm326_vm1, %v524_v2, 0.0  ;;  %v334_v26 = vsel %vm326_vm1, %v319_v3, 0.0  ;;  %v483_v53 = vld [vmem:[%s1246_s18 + $0x60] sm:$0xff]  ;;  %s1013_s9 = sshra.s32 %s679_s5, 4  ;;  %s1019_s14 = scalar_lea.hbm %s1520_s3, 16  ;;  %s1014_s9 = int_to_ptr.hbm [resolvable:$true] %s1013_s9 }
  0x44   : > { %419 = vrot.lane.b32.xlu1 %v1295_v42, %s1089_s27  ;;  %417 = vrot.lane.b32.xlu0 %v1304_v48, %s1089_s27  ;;  %v569_v28 = vsel %vm326_vm1, %v522_v4, 0.0  ;;  %v396_v29 = vsel %vm326_vm1, %v381_v7, 0.0  ;;  %v504_v33 = vsub.f32 %v478_v9, %v1338_v16  ;;  %v363_v34 = vsel %vm351_vm0, %v361_v22, %v362_v8  ;;  %v476_v4 = vld [vmem:[%s1246_s18 + $0x28] sm:$0xff]  ;;  %s1015_s11 = scalar_lea.hbm %s1014_s9, 8  ;;  %p1020_p7 = scmp.lt.s32.totalorder %s1014_s9, %s1520_s3 }
  0x45   : > { %v503_v35 = vsub.f32 %v477_v17, %v1342_v18  ;;  %v514_v36 = vsub.f32 %v1349_v20, %v1279_v31  ;;  %v1369_v37 = vand.u32 2147483647, %v506_v14  ;;  %v378_v38 = vsub.f32 %v1304_v48, %v361_v22  ;;  %v1392_v7 = vld [vmem:[%s1229_s25 + $0x28] sm:$0xff]  ;;  %p1016_p4 = scmp.ne.s32.totalorder %s1014_s9, %s1015_s11  ;;  %p1021_p8 = scmp.lt.s32.totalorder %s1019_s14, %s1015_s11 }
  0x46   : > { %v324_v40 = vand.u32 2147483647, %v316_v23  ;;  %v336_v44 = vadd.f32 %v335_v13, %v334_v26  ;;  %v1376_v45 = vadd.f32 %v570_v25, %v569_v28  ;;  %v325_v46 = vand.u32 2147483647, %v317_v21 }
  0x47   : > { %v314_v49 = vsub.f32 %v1282_v32, %v1374_v43  ;;  %v398_v50 = vadd.f32 %v397_v24, %v396_v29  ;;  %v512_v51 = vsub.f32 %v1362_v30, %v1338_v16  ;;  %v379_v52 = vsub.f32 %v1295_v42, %v363_v34  ;;  %p1017_p5 = pnand %p1016_p4, %p1166_p9  ;;  %p1022_p10 = por %p1021_p8, %p1020_p7 }
  0x48   : > { %v358_v54 = vrot.slane %v1282_v32, 7  ;;  %v528_v55 = vand.u32 2147483647, %v504_v33  ;;  %v527_v56 = vand.u32 2147483647, %v503_v35  ;;  %v501_v59 = vsub.f32 %v475_v41, %v1374_v43 }
  0x49   : > { %v322_v58 = vand.u32 2147483647, %v314_v49  ;;  %v386_v60 = vand.u32 2147483647, %v378_v38  ;;  %v332_v61 = vsel %vm326_vm1, %v324_v40, 0.0  ;;  %v511_v2 = vsub.f32 %v485_v47, %v1342_v18  ;;  %v491_v38 = vld [vmem:[%s1246_s18 + $0xa0] sm:$0xff]  ;;  %p1018_p6 = pneg %p1017_p5 }
  0x4a   : > { %v376_v3 = vsub.f32 %v1282_v32, %v358_v54  ;;  %v509_v9 = vsub.f32 %v483_v53, %v1374_v43  ;;  %v525_v13 = vand.u32 2147483647, %v501_v59  ;;  %v359_v14 = vrot.slane %v1322_v62, 7 }
  0x4b   : > { %v330_v8 = vsel %vm326_vm1, %v322_v58, 0.0  ;;  %v387_v17 = vand.u32 2147483647, %v379_v52  ;;  %v315_v23 = vsub.f32 %v1322_v62, %v1392_v7  ;;  %v551_v24 = vsel %vm326_vm1, %v527_v56, 0.0  ;;  %p1023_p13 = pnand %p1022_p10, %p1018_p6 }
  0x4c   : > { %v331_v21 = vadd.f32 %v330_v8, %v329_v63  ;;  %v384_v22 = vand.u32 2147483647, %v376_v3  ;;  %v549_v25 = vsel %vm326_vm1, %v525_v13, 0.0  ;;  %v360_v26 = vsel %vm351_vm0, %v358_v54, %v359_v14  ;;  %v484_v63 = vld [vmem:[%s1246_s18 + $0x68] sm:$0xff]  ;;  %v493_v3 = vld [vmem:[%s1246_s18 + $0xb0] sm:$0xff]  ;;  %v490_v14 = vld [vmem:[%s1246_s18 + $0x98] sm:$0xff] }
  0x4d   : > { %v502_v28 = vsub.f32 %v476_v4, %v1392_v7  ;;  %v394_v29 = vsel %vm388_vm2, %v386_v60, 0.0  ;;  %v550_v35 = vadd.f32 %v549_v25, %v1330_v11  ;;  %v533_v41 = vand.u32 2147483647, %v509_v9 }
  0x4e   : > { %v333_v33 = vadd.f32 %v332_v61, %v331_v21  ;;  %v392_v34 = vsel %vm388_vm2, %v384_v22, 0.0  ;;  %v323_v47 = vand.u32 2147483647, %v315_v23  ;;  %v377_v49 = vsub.f32 %v1322_v62, %v360_v26  ;;  %v492_v26 = vld [vmem:[%s1246_s18 + $0xa8] sm:$0xff] }
  0x4f   : > { %v393_v40 = vadd.f32 %v392_v34, %v1324_v5  ;;  %v339_v52 = vsel %vm326_vm1, %v325_v46, 0.0  ;;  %v535_v53 = vand.u32 2147483647, %v511_v2  ;;  %v552_v54 = vadd.f32 %v551_v24, %v550_v35 }
  0x50   : > { %341 = vst.msk [vmem:[#allocation2] sm:$0xff] %vm326_vm1, %v333_v33  ;;  %v526_v56 = vand.u32 2147483647, %v502_v28  ;;  %v337_v11 = vsel %vm326_vm1, %v323_v47, 0.0  ;;  %v385_v59 = vand.u32 2147483647, %v377_v49  ;;  %v510_v60 = vsub.f32 %v484_v63, %v1392_v7 }
  0x51   : > { %v395_v58 = vadd.f32 %v394_v29, %v393_v40  ;;  %v574_v5 = vsel %vm326_vm1, %v528_v55, 0.0  ;;  %v401_v61 = vsel %vm326_vm1, %v387_v17, 0.0  ;;  %v554_v4 = vadd.f32 %v1333_v12, %v552_v54 }
  0x52   : > { %v338_v46 = vadd.f32 %v337_v11, %v336_v44  ;;  %v517_v2 = vsub.f32 %v491_v38, %v1374_v43  ;;  %v557_v8 = vsel %vm326_vm1, %v533_v41, 0.0  ;;  %v399_v9 = vsel %vm326_vm1, %v385_v59, 0.0 }
  0x53   : > { %403 = vst.msk [vmem:[#allocation3 - $0x1] sm:$0xfe] %vm388_vm2, %v395_v58  ;;  %v572_v13 = vsel %vm326_vm1, %v526_v56, 0.0  ;;  %v556_v55 = vadd.f32 %v1314_v57, %v554_v4  ;;  %v400_v17 = vadd.f32 %v399_v9, %v398_v50  ;;  %v576_v12 = vsel %vm326_vm1, %v1369_v37, 0.0 }
  0x54   : > { %v340_v21 = vadd.f32 %v339_v52, %v338_v46  ;;  %v573_v22 = vadd.f32 %v572_v13, %v1376_v45  ;;  %v519_v44 = vsub.f32 %v493_v3, %v1342_v18  ;;  %v559_v43 = vsel %vm326_vm1, %v535_v53, 0.0 }
  0x55   : > { %v534_v23 = vand.u32 2147483647, %v510_v60  ;;  %v561_v24 = vsel %vm326_vm1, %v1326_v6, 0.0  ;;  %v558_v25 = vadd.f32 %v557_v8, %v556_v55  ;;  %v402_v57 = vadd.f32 %v401_v61, %v400_v17  ;;  %v494_v6 = vld [vmem:[%s1246_s18 + $0xb8] sm:$0xff] }
  0x56   : > { %342 = vst.msk [vmem:[#allocation2 + $0x8] sm:$0xff] %vm326_vm1, %v340_v21  ;;  %v575_v50 = vadd.f32 %v574_v5, %v573_v22  ;;  %v516_v45 = vsub.f32 %v490_v14, %v1274_v27  ;;  %v578_v28 = vsel %vm326_vm1, %v1346_v19, 0.0  ;;  %v536_v18 = vand.u32 2147483647, %v512_v51 }
  0x57   : > { %v541_v37 = vand.u32 2147483647, %v517_v2  ;;  %v563_v29 = vsel %vm326_vm1, %v1291_v39, 0.0  ;;  %v560_v33 = vadd.f32 %v559_v43, %v558_v25  ;;  %404 = vst.msk [vmem:[#allocation3 + $0x7] sm:$0xff] %vm326_vm1, %v402_v57  ;;  %v538_v27 = vand.u32 2147483647, %v514_v36 }
  0x58   : > { %v577_v34 = vadd.f32 %v576_v12, %v575_v50  ;;  %v543_v35 = vand.u32 2147483647, %v519_v44  ;;  %v518_v19 = vsub.f32 %v492_v26, %v1392_v7  ;;  %v580_v63 = vsel %vm326_vm1, %v534_v23, 0.0  ;;  %v495_v56 = vld [vmem:[#allocation2] sm:$0xff] }
  0x59   : > { %v562_v30 = vadd.f32 %v561_v24, %v560_v33  ;;  %v540_v38 = vand.u32 2147483647, %v516_v45  ;;  %v520_v40 = vsub.f32 %v494_v6, %v1338_v16  ;;  %v582_v39 = vsel %vm326_vm1, %v536_v18, 0.0 }
  0x5a   : > { %v579_v51 = vadd.f32 %v578_v28, %v577_v34  ;;  %v565_v41 = vsel %vm326_vm1, %v541_v37, 0.0  ;;  %v584_v52 = vsel %vm326_vm1, %v538_v27, 0.0  ;;  %v567_v31 = vsel %vm326_vm1, %v543_v35, 0.0 }
  0x5b   : > { %v564_v47 = vadd.f32 %v563_v29, %v562_v30  ;;  %v542_v20 = vand.u32 2147483647, %v518_v19  ;;  %v586_v53 = vsel %vm326_vm1, %v540_v38, 0.0  ;;  %v544_v54 = vand.u32 2147483647, %v520_v40 }
  0x5c   : > { %v581_v49 = vadd.f32 %v580_v63, %v579_v51  ;;  %vm627_vm4 = vcmask 129024   ;;  %vm468_vm5 = vcmask 121856  }
  0x5d   : > { %v566_v36 = vadd.f32 %v565_v41, %v564_v47  ;;  %v588_v16 = vsel %vm326_vm1, %v542_v20, 0.0  ;;  %v590_v5 = vsel %vm326_vm1, %v544_v54, 0.0  ;;  %v496_v3 = vld [vmem:[#allocation2 + $0x8] sm:$0xff] }
  0x5e   : > { %v583_v7 = vadd.f32 %v582_v39, %v581_v49  ;;  %v624_v38 = vld [vmem:[#allocation3] sm:$0xff] }
  0x5f   : > { %v568_v58 = vadd.f32 %v567_v31, %v566_v36  ;;  %v626_v39 = vsel %vm326_vm1, %v624_v38, 0.0 }
  0x60   : > { %v585_v11 = vadd.f32 %v584_v52, %v583_v7 }
  0x61   : > { %v592_v59 = vadd.f32 %v568_v58, %v495_v56 }
  0x62   : > { %v587_v60 = vadd.f32 %v586_v53, %v585_v11 }
  0x63   : > { %594 = vst.msk [vmem:[#allocation2] sm:$0xff] %vm326_vm1, %v592_v59 }
  0x64   : > { %v589_v61 = vadd.f32 %v588_v16, %v587_v60 }
  0x66   : > { %v591_v4 = vadd.f32 %v590_v5, %v589_v61 }
  0x68   : > { %v593_v46 = vadd.f32 %v591_v4, %v496_v3 }
  0x6a   : > { %595 = vst.msk [vmem:[#allocation2 + $0x8] sm:$0xff] %vm326_vm1, %v593_v46  ;;  %v606_v40 = vld [vmem:[#allocation2] sm:$0xff] }
  0x6b   : > { %v608_v47 = vsel %vm326_vm1, %v606_v40, 0.0 }
  0x71   : > { %v607_v41 = vld [vmem:[#allocation2 + $0x8] sm:$0xff] }
  0x72   : > { %v609_v52 = vsel %vm326_vm1, %v607_v41, 0.0 }
  0x73   : > { %v610_v31 = vadd.f32 %v609_v52, %v608_v47 }
  0x75   : > { %611 = vadd.xlane.f32.xlu1 %v610_v31 }
  0x94   : > { %v414_v2 = vpop.permute.xlu2 %413 }
  0x95   : > { %v433_v23 = vsub.f32 %v1282_v32, %v414_v2 }
  0x9c   : > { %v416_v55 = vpop.permute.xlu2 %415 }
  0x9d   : > { %v434_v12 = vsub.f32 %v1322_v62, %v416_v55 }
  0x9f   : > { %v442_v57 = vand.u32 2147483647, %v434_v12 }
  0xa1   : > { %v456_v32 = vsel %vm445_vm3, %v442_v57, 0.0 }
  0xa6   : > { %v410_v8 = vpop.permute.xlu1 %409  ;;  %v406_v9 = vpop.permute.xlu0 %405 }
  0xa7   : > { %v431_v13 = vsub.f32 %v1237_v0, %v410_v8  ;;  %v429_v14 = vsub.f32 %v1242_v1, %v406_v9 }
  0xa9   : > { %v439_v44 = vand.u32 2147483647, %v431_v13  ;;  %v437_v43 = vand.u32 2147483647, %v429_v14 }
  0xab   : > { %v447_v1 = vsel %vm445_vm3, %v439_v44, 0.0  ;;  %v446_v50 = vsel %vm445_vm3, %v437_v43, 0.0 }
  0xac   : > { %v448_v18 = vadd.f32 %v447_v1, %v446_v50 }
  0xae   : > { %v412_v21 = vpop.permute.xlu1 %411  ;;  %v408_v22 = vpop.permute.xlu0 %407 }
  0xaf   : > { %v432_v17 = vsub.f32 %v1256_v10, %v412_v21  ;;  %v430_v24 = vsub.f32 %v1262_v15, %v408_v22  ;;  %v441_v10 = vand.u32 2147483647, %v433_v23  ;;  %v599_v23 = vlaneseq }
  0xb1   : > { %v440_v25 = vand.u32 2147483647, %v432_v17  ;;  %v438_v26 = vand.u32 2147483647, %v430_v24  ;;  %v449_v29 = vsel %vm445_vm3, %v441_v10, 0.0  ;;  %v600_v24 = vshrl.u32 %v599_v23, 7 }
  0xb2   : > { %v450_v35 = vadd.f32 %v449_v29, %v448_v18 }
  0xb3   : > { %v454_v0 = vsel %vm445_vm3, %v440_v25, 0.0  ;;  %v453_v45 = vsel %vm445_vm3, %v438_v26, 0.0  ;;  %v602_v25 = vand.u32 127, %v599_v23  ;;  %vm603_vm6 = vcmp.eq.s32.totalorder %v600_v24, 0 }
  0xb4   : > { %v455_v62 = vadd.f32 %v454_v0, %v453_v45 }
  0xb5   : > { %vm604_vm7 = vcmp.eq.s32.totalorder %v602_v25, 0  ;;  %vm622_vm8 = vcmp.eq.s32.totalorder %v602_v25, 1  ;;  %vm642_vm11 = vcmp.eq.s32.totalorder %v602_v25, 2 }
  0xb6   : > { %v420_v28 = vpop.permute.xlu1 %419  ;;  %v418_v37 = vpop.permute.xlu0 %417  ;;  %v457_v34 = vadd.f32 %v456_v32, %v455_v62  ;;  %vm605_vm9 = vmand %vm603_vm6, %vm604_vm7 }
  0xb7   : > { %v436_v15 = vsub.f32 %v1295_v42, %v420_v28  ;;  %v435_v6 = vsub.f32 %v1304_v48, %v418_v37  ;;  %v625_v42 = vld [vmem:[#allocation3 + $0x8] sm:$0x7f]  ;;  %vm623_vm10 = vmand %vm603_vm6, %vm622_vm8 }
  0xb8   : > { %v628_v48 = vsel %vm627_vm4, %v625_v42, 0.0  ;;  %vm643_vm12 = vmand %vm603_vm6, %vm642_vm11 }
  0xb9   : > { %v444_v33 = vand.u32 2147483647, %v436_v15  ;;  %v443_v27 = vand.u32 2147483647, %v435_v6  ;;  %v629_v49 = vadd.f32 %v628_v48, %v626_v39 }
  0xbb   : > { %v458_v19 = vsel %vm445_vm3, %v444_v33, 0.0  ;;  %v451_v63 = vsel %vm445_vm3, %v443_v27, 0.0 }
  0xbc   : > { %v459_v30 = vadd.f32 %v458_v19, %v457_v34  ;;  %v452_v51 = vadd.f32 %v451_v63, %v450_v35 }
  0xbe   : > { %464 = vrot.lane.b32.xlu0 %v459_v30, %s1090_s24  ;;  %462 = vrot.lane.b32.xlu2 %v452_v51, %s1090_s24 }
  0xe7   : > { %630 = vadd.xlane.f32.xlu2 %v629_v49 }
  0xe8   : > { %v612_v59 = vpop.xlane.xlu1 %611 }
  0xe9   : > { %v613_v60 = vrot.slane %v612_v59, 4 }
  0xeb   : > { %v614_v61 = vadd.f32 %v613_v60, %v612_v59 }
  0xed   : > { %v615_v4 = vrot.slane %v614_v61, 2 }
  0xef   : > { %v616_v2 = vadd.f32 %v615_v4, %v614_v61 }
  0xf1   : > { %v617_v9 = vrot.slane %v616_v2, 1 }
  0xf3   : > { %v618_v14 = vadd.f32 %v617_v9, %v616_v2 }
  0xf5   : > { %827 = vpush %v618_v14 }
 0x118   : > { %v463_v20 = vpop.permute.xlu2 %462 }
 0x119   : > { %469 = vst.msk [vmem:[#allocation4] sm:$0xff] %vm468_vm5, %v463_v20 }
 0x120   : > { %v644_v7 = vld [vmem:[#allocation4] sm:$0xff] }
 0x121   : > { %v647_v54 = vsel %vm468_vm5, %v644_v7, 0.0 }
 0x126   : > { %s828_s29 = spop %827 }
 0x127   : > { %v620_v26 = vstv %s828_s29 }
 0x128   : > { %v621_v57 = vsel %vm605_vm9, %v620_v26, 0.0 }
 0x130   : > { %v465_v36 = vpop.permute.xlu0 %464 }
 0x131   : > { %470 = vst.msk [vmem:[#allocation4 + $0x8] sm:$0xff] %vm468_vm5, %v465_v36 }
 0x138   : > { %v645_v53 = vld [vmem:[#allocation4 + $0x8] sm:$0xff] }
 0x139   : > { %v648_v56 = vsel %vm468_vm5, %v645_v53, 0.0 }
 0x13a   : > { %v649_v58 = vadd.f32 %v648_v56, %v647_v54 }
 0x13c   : > { %650 = vadd.xlane.f32.xlu0 %v649_v58 }
 0x15a   : > { %v631_v11 = vpop.xlane.xlu2 %630 }
 0x15b   : > { %v632_v16 = vrot.slane %v631_v11, 4 }
 0x15d   : > { %v633_v5 = vadd.f32 %v632_v16, %v631_v11 }
 0x15f   : > { %v634_v3 = vrot.slane %v633_v5, 2 }
 0x161   : > { %v635_v46 = vadd.f32 %v634_v3, %v633_v5 }
 0x163   : > { %v636_v8 = vrot.slane %v635_v46, 1 }
 0x165   : > { %v637_v13 = vadd.f32 %v636_v8, %v635_v46 }
 0x167   : > { %829 = vpush %v637_v13 }
 0x198   : > { %s830_s30 = spop %829 }
 0x199   : > { %v639_v0 = vstv %s830_s30 }
 0x19a   : > { %v640_v1 = vsel %vm623_vm10, %v639_v0, 0.0 }
 0x19b   : > { %v641_v50 = vadd.f32 %v640_v1, %v621_v57 }
 0x1af   : > { %v651_v55 = vpop.xlane.xlu0 %650 }
 0x1b0   : > { %v652_v21 = vrot.slane %v651_v55, 4 }
 0x1b2   : > { %v653_v17 = vadd.f32 %v652_v21, %v651_v55 }
 0x1b4   : > { %v654_v22 = vrot.slane %v653_v17, 2 }
 0x1b6   : > { %v655_v12 = vadd.f32 %v654_v22, %v653_v17 }
 0x1b8   : > { %v656_v44 = vrot.slane %v655_v12, 1 }
 0x1ba   : > { %v657_v43 = vadd.f32 %v656_v44, %v655_v12 }
 0x1bc   : > { %831 = vpush %v657_v43 }
 0x1ed   : > { %s832_s10 = spop %831 }
 0x1ee   : > { %v659_v10 = vstv %s832_s10 }
 0x1ef   : > { %v660_v45 = vsel %vm643_vm12, %v659_v10, 0.0 }
 0x1f0   : > { %v661_v62 = vadd.f32 %v660_v45, %v641_v50 }
 0x1f2   : > { %662 = vst [vmem:[%s288_s6] sm:$0xff] %v661_v62 }
 0x1f3   : > { %1026 = shalt.err (!%p1023_p13)
}
 0x1f4   : > { %839 = dma.vmem_to_hbm [thread:$0]  (%p1166_p9), %s677_s8, 128, %s679_s5, %s664_s15  }
 0x1f5 PF: > { %s1545_s1 = sld [smem:[#allocation15_spill]]  ;;  %p852_p0 = pnand %p806_p12, %p1173_p11 }
 0x1f6   : > { %s1547_s26 = sld [smem:[#allocation17_spill]] }
 0x1f7   : > { %p853_p1 = pneg %p852_p0 }
 0x1fb   : > { %s690_s27 = sand.u32 1, %s1545_s1  }
 0x1fc   : > { %s691_s18 = scalar_lea.sflag [#allocation7], %s690_s27 }
 0x1fd   : > { %1060 = dma.done.wait (%p853_p1), %s691_s18, 128  }
 0x1fe   : > { %1062 = vsyncadd (%p853_p1), %s691_s18, 4294967168  ;;  %s22_s17 = sadd.s32 1, %s1547_s26   ;;  %s1548_s24 = sld [smem:[#allocation16_spill]] }
 0x1ff   : > { %p19_p2 = scmp.ge.s32.totalorder %s22_s17, 4   ;;  %s1549_s14 = sld [smem:[#allocation20_spill]] }
 0x200   : > { %s1550_s29 = sld [smem:[#allocation18_spill]]  ;;  %s1551_s12 = smov %s1069_s13 }
 0x201   : > { %s1553_s15 = smov %s1081_s16 }
 0x202   :  { %21 = sbr.rel (!%p19_p2) target bundleno = 10 (0xa), region = 109 }
 0x204   : > { %s1552_s13 = smov %s1548_s24 }
 0x206   : > { %s1554_s16 = smov %s1550_s29 }
 0x207   :  { %697 = vsyncpa [#allocation6], 1 }
 0x208   :  { %699 = vsyncpa [#allocation6 + $0x1], 1 }
 0x209   :  { %700 = vsyncpa [#allocation9], 1 }
 0x20a   :  { %702 = vsyncpa [#allocation9 + $0x1], 1 }
 0x20b   :  { %703 = vsyncpa [#allocation7], 1 }
 0x20c   :  { %705 = vsyncpa [#allocation7 + $0x1], 1 }

</bundles_post_ra>
